<compile_context>
chip_gen: v5e
topology: v5e:2x2
jax: 0.10.0
libtpu: 0.0.40
codegen_flags: <defaults>
</compile_context>

<pallas_src>
import functools
import math

import jax
import jax.numpy as jnp
from jax.experimental import pallas as pl
from jax.experimental.pallas import tpu as pltpu


# ------------------------------ helpers ------------------------------------ #

_NORM_EPS_SQ = 1e-24  # (1e-12)^2 -> matches F.normalize(p=2, eps=1e-12)


def _round_up(x, m):
    return ((x + m - 1) // m) * m


def _row_normalize_f32(v):
    """Row-wise L2 normalize in f32: v / max(||v||, 1e-12) (rsqrt on the EUP)."""
    ss = jnp.sum(v * v, axis=1, keepdims=True)
    return v * jax.lax.rsqrt(jnp.maximum(ss, _NORM_EPS_SQ))


def _tiles(B, C, F, tb_max=128, tc_max=512):
    TB = min(tb_max, _round_up(B, 8))
    B_pad = _round_up(B, TB)
    TC = min(tc_max, _round_up(C, 128))      # lane-dense, MXU-friendly C tiles
    C_pad = _round_up(C, TC)
    F_pad = _round_up(F, 128)                # pad feature axis to full lanes
    return TB, B_pad, TC, C_pad, F_pad


def _pad2(a, rows, cols):
    r, c = a.shape
    if r == rows and c == cols:
        return a
    return jnp.pad(a, ((0, rows - r), (0, cols - c)))


# ------------------------------ kernels ------------------------------------ #

def _rownorm_kernel(w_ref, o_ref):
    """Row-wise L2 normalization (used to pre-normalize W for inference)."""
    o_ref[...] = _row_normalize_f32(w_ref[...].astype(jnp.float32))


def _logits_kernel(x_ref, w_ref, o_ref, xn_ref, *, mxu_dtype, normalize_w):
    """label=None path: o = normalize(x) @ normalize(W).T for one (i, j) tile."""
    j = pl.program_id(1)

    @pl.when(j == 0)                         # normalize x once per B-tile
    def _():
        xn_ref[...] = _row_normalize_f32(
            x_ref[...].astype(jnp.float32)).astype(mxu_dtype)

    w = w_ref[...].astype(jnp.float32)
    if normalize_w:                          # skipped when W pre-normalized
        w = _row_normalize_f32(w)
    o_ref[...] = jax.lax.dot_general(
        xn_ref[...], w.astype(mxu_dtype),
        dimension_numbers=(((1,), (1,)), ((), ())),   # contract feature axis
        preferred_element_type=jnp.float32)


def _adacos_main_kernel(s_ref, lab_ref, x_ref, w_ref,
                        logits_ref, stats_ref, xn_ref,
                        *, c_valid, c_pad, mxu_dtype):
    """One (B-tile, C-tile) step of the training path."""
    j = pl.program_id(1)
    tb = x_ref.shape[0]
    tc = w_ref.shape[0]

    @pl.when(j == 0)                         # normalize x once per B-tile
    def _():
        xn_ref[...] = _row_normalize_f32(
            x_ref[...].astype(jnp.float32)).astype(mxu_dtype)

    wn = _row_normalize_f32(w_ref[...].astype(jnp.float32)).astype(mxu_dtype)

    # cosine logits on the MXU, [TB,F]x[TC,F] contracted on F (no transpose)
    logits = jax.lax.dot_general(
        xn_ref[...], wn,
        dimension_numbers=(((1,), (1,)), ((), ())),
        preferred_element_type=jnp.float32)
    logits_ref[...] = logits

    # one-hot for THIS C tile (global column index vs integer label)
    lab = lab_ref[...]                                            # (tb,1) i32
    col = jax.lax.broadcasted_iota(jnp.int32, (tb, tc), 1) + j * tc
    one_hot = col == lab

    # clamped cosine at the label position (only the tile holding the label
    # contributes a non-zero value; accumulated across C tiles)
    clamped = jnp.clip(logits, -1.0 + 1e-7, 1.0 - 1e-7)
    cos_lab = jnp.sum(jnp.where(one_hot, clamped, 0.0), axis=1, keepdims=True)

    # per-row B_avg numerator: sum exp(s*logits) over valid classes minus the
    # label term (avoids a second full-tile select).
    s = s_ref[0, 0]
    e = jnp.exp(s * logits)
    if c_pad != c_valid:                       # mask padded class columns
        e = jnp.where(col < c_valid, e, 0.0)
    row_sum = jnp.sum(e, axis=1, keepdims=True)
    in_tile = jnp.logical_and(lab >= j * tc, lab < (j + 1) * tc)
    row_bsum = row_sum - jnp.where(in_tile, jnp.exp(s * cos_lab), 0.0)

    # lane-dense (tb, 128) stats slab: lane 0 = cos@label, lane 1 = row bsum
    lane = jax.lax.broadcasted_iota(jnp.int32, (tb, 128), 1)
    contrib = jnp.where(lane == 0, cos_lab,
                        jnp.where(lane == 1, row_bsum, 0.0))

    @pl.when(j == 0)                           # init on first C step
    def _():
        stats_ref[...] = contrib

    @pl.when(j > 0)                            # accumulate across C steps
    def _():
        stats_ref[...] += contrib


def _scale_kernel(s_ref, logits_ref, out_ref):
    """output = s_new * logits, written back into the SAME (aliased) buffer."""
    out_ref[...] = s_ref[0, 0] * logits_ref[...]


# ------------------------------ wrappers ------------------------------------ #

def adacos_init(num_features, num_classes, key):
    """Deterministic Xavier-uniform init of W [num_classes, num_features]."""
    bound = math.sqrt(6.0 / (num_features + num_classes))
    W = jax.random.uniform(key, (num_classes, num_features),
                           dtype=jnp.float32, minval=-bound, maxval=bound)
    s0 = math.sqrt(2.0) * math.log(num_classes - 1)
    return W, jnp.float32(s0)


def adacos_normalize_weight(W, *, tile_rows=256):
    """Row-normalize W once (cache and pass w_prenormalized=True at inference)."""
    C, F = W.shape
    TR = min(tile_rows, _round_up(C, 8))
    C_pad = _round_up(C, TR)
    F_pad = _round_up(F, 128)
    Wp = _pad2(W.astype(jnp.float32), C_pad, F_pad)
    out = pl.pallas_call(
        _rownorm_kernel,
        grid=(C_pad // TR,),
        in_specs=[pl.BlockSpec((TR, F_pad), lambda r: (r, 0))],
        out_specs=pl.BlockSpec((TR, F_pad), lambda r: (r, 0)),
        out_shape=jax.ShapeDtypeStruct((C_pad, F_pad), jnp.float32),
        compiler_params=pltpu.CompilerParams(dimension_semantics=("parallel",)),
    )(Wp)
    return out[:C, :F]


def adacos_forward(x, W, s, label=None, *, mxu_dtype=jnp.float32,
                   w_prenormalized=False, tb_max=128, tc_max=512):
    """Returns (output, new_s). Mirrors AdaCos.forward (self.s is stateful).

    mxu_dtype=jnp.bfloat16 halves the dominant HBM traffic (W) and doubles MXU
    throughput; the clamp / acos / B_avg math stays in f32.
    """
    B, F = x.shape
    C = W.shape[0]
    TB, B_pad, TC, C_pad, F_pad = _tiles(B, C, F, tb_max, tc_max)
    nb, nc = B_pad // TB, C_pad // TC

    # Pad to MXU/lane-friendly shapes (in real use, keep W stored pre-padded).
    xp = _pad2(x.astype(jnp.float32), B_pad, F_pad)
    Wp = _pad2(W.astype(jnp.float32), C_pad, F_pad)

    if label is None:
        kern = functools.partial(_logits_kernel, mxu_dtype=mxu_dtype,
                                 normalize_w=not w_prenormalized)
        logits = pl.pallas_call(
            kern,
            grid=(nb, nc),
            in_specs=[pl.BlockSpec((TB, F_pad), lambda i, j: (i, 0)),
                      pl.BlockSpec((TC, F_pad), lambda i, j: (j, 0))],
            out_specs=pl.BlockSpec((TB, TC), lambda i, j: (i, j)),
            out_shape=jax.ShapeDtypeStruct((B_pad, C_pad), jnp.float32),
            scratch_shapes=[pltpu.VMEM((TB, F_pad), mxu_dtype)],
            compiler_params=pltpu.CompilerParams(
                dimension_semantics=("parallel", "arbitrary")),
        )(xp, Wp)
        return logits[:B, :C], s

    # ------------------------- training path -------------------------------- #
    lab_pad = jnp.full((B_pad, 1), -1, jnp.int32).at[:B, 0].set(
        label.astype(jnp.int32))                     # -1 => padded rows never hit
    s_in = jnp.asarray(s, jnp.float32).reshape(1, 1)

    kern = functools.partial(_adacos_main_kernel, c_valid=C, c_pad=C_pad,
                             mxu_dtype=mxu_dtype)
    logits_p, stats = pl.pallas_call(
        kern,
        grid=(nb, nc),
        in_specs=[
            pl.BlockSpec(memory_space=pltpu.MemorySpace.SMEM),     # s (1,1)
            pl.BlockSpec((TB, 1), lambda i, j: (i, 0)),            # label
            pl.BlockSpec((TB, F_pad), lambda i, j: (i, 0)),        # x
            pl.BlockSpec((TC, F_pad), lambda i, j: (j, 0)),        # W (streamed)
        ],
        out_specs=(
            pl.BlockSpec((TB, TC), lambda i, j: (i, j)),           # logits
            pl.BlockSpec((TB, 128), lambda i, j: (i, 0)),          # stats (acc j)
        ),
        out_shape=(jax.ShapeDtypeStruct((B_pad, C_pad), jnp.float32),
                   jax.ShapeDtypeStruct((B_pad, 128), jnp.float32)),
        scratch_shapes=[pltpu.VMEM((TB, F_pad), mxu_dtype)],
        compiler_params=pltpu.CompilerParams(
            dimension_semantics=("parallel", "arbitrary")),
    )(s_in, lab_pad, xp, Wp)

    # tiny scalar "no_grad" stats on B values — plain JAX glue.
    cos_lab = stats[:B, 0]
    row_bsum = stats[:B, 1]
    theta_lab = jnp.arccos(cos_lab)
    B_avg = jnp.sum(row_bsum) / B
    theta_med = jnp.sort(theta_lab)[(B - 1) // 2]      # torch lower median
    s_new = jnp.log(B_avg) / jnp.cos(
        jnp.minimum(jnp.float32(math.pi / 4.0), theta_med))

    # scale the logits buffer IN PLACE (aliased): no extra BxC HBM allocation.
    out_p = pl.pallas_call(
        _scale_kernel,
        grid=(nb, nc),
        in_specs=[pl.BlockSpec(memory_space=pltpu.MemorySpace.SMEM),
                  pl.BlockSpec((TB, TC), lambda i, j: (i, j))],
        out_specs=pl.BlockSpec((TB, TC), lambda i, j: (i, j)),
        out_shape=jax.ShapeDtypeStruct((B_pad, C_pad), jnp.float32),
        input_output_aliases={1: 0},
        compiler_params=pltpu.CompilerParams(
            dimension_semantics=("parallel", "parallel")),
    )(jnp.reshape(s_new, (1, 1)).astype(jnp.float32), logits_p)

    return out_p[:B, :C], s_new


# --------------------------- pure-JAX reference ----------------------------- #

def adacos_reference(x, W, s, label=None):
    xn = x / jnp.maximum(jnp.linalg.norm(x, axis=1, keepdims=True), 1e-12)
    wn = W / jnp.maximum(jnp.linalg.norm(W, axis=1, keepdims=True), 1e-12)
    logits = xn @ wn.T
    if label is None:
        return logits, s
    theta = jnp.arccos(jnp.clip(logits, -1.0 + 1e-7, 1.0 - 1e-7))
    one_hot = jax.nn.one_hot(label, W.shape[0], dtype=jnp.float32)
    B_avg = jnp.sum(jnp.where(one_hot < 1, jnp.exp(s * logits), 0.0)) / x.shape[0]
    theta_lab = jnp.sum(theta * one_hot, axis=1)
    theta_med = jnp.sort(theta_lab)[(x.shape[0] - 1) // 2]
    s_new = jnp.log(B_avg) / jnp.cos(jnp.minimum(jnp.float32(math.pi / 4), theta_med))
    return s_new * logits, s_new


# --------------------------------- main -------------------------------------- #

if __name__ == "__main__":
    B, F_, C = 8, 32, 16   # batch, num_features, num_classes

    key = jax.random.PRNGKey(0)
    kx, kw, kl = jax.random.split(key, 3)

    x = jax.random.normal(kx, (B, F_), dtype=jnp.float32)
    label = jax.random.randint(kl, (B,), 0, C, dtype=jnp.int32)
    W, s0 = adacos_init(F_, C, kw)

    # label=None inference path (pure cosine logits), W pre-normalized once.
    Wn = adacos_normalize_weight(W)
    logits_only, _ = adacos_forward(x, Wn, s0, label=None, w_prenormalized=True)
    logits_only = jax.block_until_ready(logits_only)
    assert logits_only.shape == (B, C)
    ref_logits, _ = adacos_reference(x, W, s0, None)
    assert jnp.allclose(logits_only, ref_logits, atol=1e-4, rtol=1e-4), \
        "inference logits mismatch"

    # training path (adaptive scale update + in-place scaled logits), f32 MXU.
    out, s_new = adacos_forward(x, W, s0, label=label)
    out = jax.block_until_ready(out)
    s_new = jax.block_until_ready(s_new)
    assert out.shape == (B, C)

    ref_out, ref_s = adacos_reference(x, W, s0, label)
    assert jnp.allclose(out, ref_out, atol=1e-4, rtol=1e-4), "output mismatch"
    assert jnp.allclose(s_new, ref_s, atol=1e-4, rtol=1e-4), "scale mismatch"

    # bf16 MXU-input variant (halves W HBM traffic, 2x MXU rate): loose check.
    out_bf16, _ = adacos_forward(x, W, s0, label=label, mxu_dtype=jnp.bfloat16)
    out_bf16 = jax.block_until_ready(out_bf16)
    assert jnp.allclose(out_bf16, ref_out, atol=1e-1, rtol=1e-1), \
        "bf16 path diverged"

    print("KERNEL_OK")
</pallas_src>

<mosaic_0001>
module attributes {stable_mosaic.version = 11 : i64} {
  func.func @_rownorm_kernel(%arg0: i32, %arg1: memref<16x128xf32, #tpu.memory_space<vmem>>, %arg2: memref<16x128xf32, #tpu.memory_space<vmem>>) attributes {dimension_semantics = [#tpu.dimension_semantics<parallel>], iteration_bounds = array<i64: 1>, scalar_prefetch = 0 : i64, scratch_operands = 0 : i64, tpu.core_type = #tpu.core_type<tc>, window_params = [{transform_indices = @transform_0, window_bounds = array<i64: 16, 128>}, {transform_indices = @transform_1, window_bounds = array<i64: 16, 128>}]} {
    %c0 = arith.constant 0 : index
    %c0_0 = arith.constant 0 : index
    %0 = vector.load %arg1[%c0, %c0_0] : memref<16x128xf32, #tpu.memory_space<vmem>>, vector<16x128xf32>
    %1 = arith.mulf %0, %0 : vector<16x128xf32>
    %cst = arith.constant dense<0.000000e+00> : vector<16xf32>
    %2 = vector.multi_reduction <add>, %1, %cst [1] : vector<16x128xf32> to vector<16xf32>
    %3 = vector.shape_cast %2 : vector<16xf32> to vector<16x1xf32>
    %cst_1 = arith.constant 1.000000e-24 : f32
    %4 = vector.broadcast %cst_1 : f32 to vector<16x1xf32>
    %5 = arith.maximumf %3, %4 : vector<16x1xf32>
    %6 = math.rsqrt %5 : vector<16x1xf32>
    %7 = vector.broadcast %6 : vector<16x1xf32> to vector<16x128xf32>
    %8 = arith.mulf %0, %7 : vector<16x128xf32>
    %c0_2 = arith.constant 0 : index
    %c0_3 = arith.constant 0 : index
    %9 = vector.load %arg2[%c0_2, %c0_3] : memref<16x128xf32, #tpu.memory_space<vmem>>, vector<16x128xf32>
    tpu.vector_store %arg2[%c0_2, %c0_3], %8 {strides = array<i32>} : memref<16x128xf32, #tpu.memory_space<vmem>>, vector<16x128xf32>,
    return
  }
  func.func @transform_0(%arg0: i32) -> (i32, i32) {
    %c0_i32 = arith.constant 0 : i32
    %c0_i32_0 = arith.constant 0 : i32
    return %arg0, %c0_i32 : i32, i32
  }
  func.func @transform_1(%arg0: i32) -> (i32, i32) {
    %c0_i32 = arith.constant 0 : i32
    %c0_i32_0 = arith.constant 0 : i32
    return %arg0, %c0_i32 : i32, i32
  }
}

</mosaic_0001>

<bundles_post_ra>
// kernel: tpu_custom_call.1
= control target key start
LH: loop header
LB: loop body
LE: loop exit
PB: predicated region body
PF: predicated region fallthrough
CT: control target
= control target key end

     0   :  { %6 = vsyncpa [#allocation3], 0  ;;  %s164_s0 = inlined_call_operand.hbm [shape: f32[16,128], index: 0, kind: input, shape index: {}]   ;;  %s165_s1 = inlined_call_operand.hbm [shape: f32[16,128], index: 1, kind: output, shape index: {}]  }
   0x1   :  { %7 = vsyncpa [#allocation4], 0  ;;  %s12_s8 = sshll.u32 %s164_s0, 4  ;;  %s138_s9 = smov [#allocation2]   ;;  %s13_s8 = int_to_ptr.hbm [resolvable:$true] %s12_s8 }
   0x2   :  { %s14_s10 = sshll.u32 %s138_s9, 4  ;;  %s139_s11 = smov 128   ;;  %s15_s10 = int_to_ptr.vmem [resolvable:$true] %s14_s10 }
   0x3   :  { %s140_s12 = smov 8  }
   0x4   :  { %20 = dma.hbm_to_vmem [thread:$0]  %s13_s8, 256, %s15_s10, [#allocation3], %s139_s11, %s139_s11, %s140_s12  }
   0x5   :  { %134 = dma.done.wait [#allocation3], 256  }
   0x6   :  { %135 = vsyncadd [#allocation3], 4294967040  ;;  %v25_v0 = vld [vmem:[#allocation2] sm:$0xff]  ;;  %v26_v2 = vld [vmem:[#allocation2 + $0x8] sm:$0xff]  ;;  %s141_s0 = smov [#allocation5]   ;;  %s65_s16 = sshll.u32 %s165_s1, 4  ;;  %s66_s16 = int_to_ptr.hbm [resolvable:$true] %s65_s16 }
   0x7   :  { %v27_v1 = vmul.f32 %v25_v0, %v25_v0  ;;  %v28_v3 = vmul.f32 %v26_v2, %v26_v2  ;;  %s63_s13 = sshll.u32 %s141_s0, 4  ;;  %s64_s13 = int_to_ptr.vmem [resolvable:$true] %s63_s13 }
   0x9   :  { %29 = vadd.xlane.f32.xlu0 %v27_v1 }
  0x11   :  { %31 = vadd.xlane.f32.xlu0 %v28_v3 }
  0x7c   :  { %v30_v4 = vpop.xlane.xlu0 %29 }
  0x7d   :  { %v33_v5 = vmax.f32 %v30_v4, 1e-24 }
  0x7f   :  { %82 = vrsqrt.f32 %v33_v5  ;;  %vm41_vm1 = vweird.f32 %v33_v5 }
  0x84   :  { %v32_v6 = vpop.xlane.xlu0 %31 }
  0x85   :  { %v83_v7 = vpop.eup %82  ;;  %v34_v8 = vmax.f32 %v32_v6, 1e-24 }
  0x86   :  { %v36_v9 = vmul.f32 %v83_v7, %v33_v5  ;;  %vm42_vm0 = vweird.f32 %v83_v7 }
  0x87   :  { %84 = vrsqrt.f32 %v34_v8  ;;  %vm43_vm2 = vmor %vm41_vm1, %vm42_vm0  ;;  %vm51_vm4 = vweird.f32 %v34_v8 }
  0x88   :  { %v37_v10 = vmul.f32 %v83_v7, %v36_v9 }
  0x8a   :  { %v38_v11 = vmul.f32 0.5, %v37_v10 }
  0x8c   :  { %v39_v12 = vsub.f32 1.5, %v38_v11 }
  0x8d   :  { %v85_v13 = vpop.eup %84 }
  0x8e   :  { %v40_v14 = vmul.f32 %v83_v7, %v39_v12  ;;  %v46_v15 = vmul.f32 %v85_v13, %v34_v8  ;;  %vm52_vm3 = vweird.f32 %v85_v13 }
  0x8f   :  { %vm53_vm5 = vmor %vm51_vm4, %vm52_vm3 }
  0x90   :  { %v44_v16 = vsel %vm43_vm2, %v83_v7, %v40_v14  ;;  %v47_v17 = vmul.f32 %v85_v13, %v46_v15 }
  0x91   :  { %v55_v18 = vmul.f32 %v44_v16, %v25_v0 }
  0x92   :  { %v48_v19 = vmul.f32 0.5, %v47_v17 }
  0x93   :  { %57 = vst [vmem:[#allocation5] sm:$0xff] %v55_v18 }
  0x94   :  { %v49_v20 = vsub.f32 1.5, %v48_v19 }
  0x96   :  { %v50_v21 = vmul.f32 %v85_v13, %v49_v20 }
  0x98   :  { %v54_v22 = vsel %vm53_vm5, %v85_v13, %v50_v21 }
  0x99   :  { %v56_v23 = vmul.f32 %v54_v22, %v26_v2 }
  0x9b   :  { %58 = vst [vmem:[#allocation5 + $0x8] sm:$0xff] %v56_v23 }
  0x9c   :  { %71 = dma.vmem_to_hbm [thread:$0]  %s64_s13, 256, %s66_s16, [#allocation4], %s139_s11, %s139_s11, %s140_s12  }
  0x9d   :  { %136 = dma.done.wait [#allocation4], 256  }
  0x9e   :  { %137 = vsyncadd [#allocation4], 4294967040 }
  0x9f   :  { %76 = vsyncpa [#allocation3], 1 }
  0xa0   :  { %77 = vsyncpa [#allocation4], 1 }

</bundles_post_ra>
